<compile_context>
chip_gen: v6e
topology: v6e:2x2x1
jax: 0.10.0
libtpu: 0.0.40
codegen_flags: <defaults>
</compile_context>

<pallas_src>
import math

import jax
import jax.numpy as jnp
from jax import lax
from jax.experimental import pallas as pl
from jax.experimental.pallas import tpu as pltpu


# ----------------------------- small math helpers ---------------------------
def _silu(x):
    return x * (1.0 / (1.0 + jnp.exp(-x)))


def _softplus(x):
    return jnp.where(x > 20.0, x, jnp.log(1.0 + jnp.exp(jnp.minimum(x, 20.0))))


# ----------------------- conv 3x3 "SAME" as one big matmul ------------------
def _make_conv_kernel(relu, residual):
    def kernel(w_ref, p_ref, b_ref, *rest):
        if residual:
            res_ref, o_ref = rest
        else:
            (o_ref,) = rest
        acc = jnp.dot(w_ref[...].astype(jnp.float32),
                      p_ref[...].astype(jnp.float32),
                      preferred_element_type=jnp.float32)       # (Cout, B*HW)
        acc = acc + b_ref[...]
        if relu:
            acc = jnp.maximum(acc, 0.0)
        if residual:
            acc = acc + res_ref[...].astype(jnp.float32)
        o_ref[...] = acc.astype(o_ref.dtype)
    return kernel


def conv3x3_cf(x_nchw, w_oihw, bias, relu=False, residual_cf=None):
    """3x3 stride-1 pad-1 conv.  Returns channels-first (Cout, B*H*W)."""
    B, Cin, H, W = x_nchw.shape
    Cout = w_oihw.shape[0]
    xp = jnp.pad(x_nchw, ((0, 0), (0, 0), (1, 1), (1, 1)))
    rows = []
    for dy in range(3):
        for dx in range(3):
            sl = xp[:, :, dy:dy + H, dx:dx + W]                     # (B,Cin,H,W)
            rows.append(jnp.transpose(sl, (1, 0, 2, 3)).reshape(Cin, B * H * W))
    patches = jnp.concatenate(rows, axis=0)                         # (9Cin, B*HW)
    wmat = jnp.transpose(w_oihw, (0, 2, 3, 1)).reshape(Cout, 9 * Cin)
    bcol = bias.reshape(Cout, 1)
    args = [wmat, patches, bcol]
    if residual_cf is not None:
        args.append(residual_cf)
    return pl.pallas_call(
        _make_conv_kernel(relu, residual_cf is not None),
        out_shape=jax.ShapeDtypeStruct((Cout, B * H * W), x_nchw.dtype),
    )(*args)


# ------------------------- Mamba block building blocks -----------------------
def _causal_conv_silu(x_in, wc, bc, dc):
    """Causal depthwise conv1d over rows (seq) + bias + SiLU.  x_in: (L, di)."""
    L, di = x_in.shape
    row = lax.broadcasted_iota(jnp.int32, (L, di), 0)
    acc = x_in * wc[dc - 1:dc, :]
    for sft in range(1, dc):
        shifted = jnp.roll(x_in, sft, axis=0)                  # x[(l - sft) mod L]
        shifted = jnp.where(row >= sft, shifted, 0.0)          # zero the wrap
        acc = acc + shifted * wc[dc - 1 - sft:dc - sft, :]
    return _silu(acc + bc)


def _mamba_flat(h, wrefs, dims, dA_scr, dBu_scr, st_scr):
    """Mamba block with lane-dense flattened scan (state index k = i*ds + s).

    h: (L, d_model) f32 value.  Used for model1/model2 (d_inner*d_state = 128).
    """
    f32 = jnp.float32
    di, ds = dims["d_inner"], dims["d_state"]
    dr, dc = dims["dt_rank"], dims["d_conv"]
    L = h.shape[0]
    K = di * ds
    win_r, wconv_r, bconv_r, wx_r, wdt_r, bdt_r, alogf_r, dD_r, wout_r = wrefs

    xz = jnp.dot(h, win_r[...], preferred_element_type=f32)        # (L, 2di)
    x_in = xz[:, :di]
    z = xz[:, di:]
    xc = _causal_conv_silu(x_in, wconv_r[...], bconv_r[...], dc)   # (L, di)

    xdbl = jnp.dot(xc, wx_r[...], preferred_element_type=f32)      # (L, dr+2ds)
    dt_raw = xdbl[:, :dr]
    Bm = xdbl[:, dr:dr + ds]
    Cm = xdbl[:, dr + ds:dr + 2 * ds]
    if dr == 1:   # dt_proj with K=1: VPU broadcast instead of MXU matmul
        dt_pre = dt_raw * wdt_r[...] + bdt_r[...]
    else:
        dt_pre = jnp.dot(dt_raw, wdt_r[...], preferred_element_type=f32) + bdt_r[...]
    delta = _softplus(dt_pre)                                      # (L, di)

    # 0/1 expansion / reduction matrices for the flattened (k = i*ds + s) layout.
    kk = lax.broadcasted_iota(jnp.int32, (di, K), 1)
    ii = lax.broadcasted_iota(jnp.int32, (di, K), 0)
    R = (kk // ds == ii).astype(f32)                               # repeat over s
    kk2 = lax.broadcasted_iota(jnp.int32, (ds, K), 1)
    ss = lax.broadcasted_iota(jnp.int32, (ds, K), 0)
    S = (kk2 % ds == ss).astype(f32)                               # repeat over i
    kk3 = lax.broadcasted_iota(jnp.int32, (K, di), 0)
    ii3 = lax.broadcasted_iota(jnp.int32, (K, di), 1)
    G = (kk3 // ds == ii3).astype(f32)                             # group-sum -> i

    A_flat = -jnp.exp(alogf_r[...].astype(f32))                    # (1, K)
    delta_rep = jnp.dot(delta, R, preferred_element_type=f32)      # (L, K)
    du_rep = jnp.dot(delta * xc, R, preferred_element_type=f32)    # (L, K)
    B_rep = jnp.dot(Bm, S, preferred_element_type=f32)             # (L, K)
    C_rep = jnp.dot(Cm, S, preferred_element_type=f32)             # (L, K)

    dA_scr[...] = jnp.exp(delta_rep * A_flat)                      # lane-dense
    dBu_scr[...] = B_rep * du_rep

    # Chunked selective scan: state lives in vregs, full (8, K) tile loads/stores.
    CH = 8

    def chunk(ci, st):
        base = pl.multiple_of(ci * CH, CH)
        dA_blk = dA_scr[pl.ds(base, CH), :]
        dBu_blk = dBu_scr[pl.ds(base, CH), :]
        rows = []
        for j in range(CH):                                        # static unroll
            st = dA_blk[j:j + 1, :] * st + dBu_blk[j:j + 1, :]
            rows.append(st)
        st_scr[pl.ds(base, CH), :] = jnp.concatenate(rows, axis=0)
        return st

    lax.fori_loop(0, L // CH, chunk, jnp.zeros((1, K), f32))

    # y[l, i] = sum_s C[l, s] * state[l, i*ds+s]  -> one batched MXU matmul.
    y_ssm = jnp.dot(st_scr[...] * C_rep, G, preferred_element_type=f32)  # (L, di)
    y = (y_ssm + xc * dD_r[...]) * _silu(z)
    return jnp.dot(y, wout_r[...], preferred_element_type=f32)           # (L, dm)


def _mamba_wide(h, wrefs, dims):
    """Mamba block for short L / wide d_inner (model3).  h: (L, d_model) f32."""
    f32 = jnp.float32
    di, ds = dims["d_inner"], dims["d_state"]
    dr, dc = dims["dt_rank"], dims["d_conv"]
    L = h.shape[0]
    win_r, wconv_r, bconv_r, wx_r, wdt_r, bdt_r, alog_r, dD_r, wout_r = wrefs

    xz = jnp.dot(h, win_r[...], preferred_element_type=f32)        # (L, 2di)
    x_in = xz[:, :di]
    z = xz[:, di:]
    xc = _causal_conv_silu(x_in, wconv_r[...], bconv_r[...], dc)   # (L, di)
    xdbl = jnp.dot(xc, wx_r[...], preferred_element_type=f32)      # (L, dr+2ds)
    dt_raw = xdbl[:, :dr]
    Bm = xdbl[:, dr:dr + ds]
    Cm = xdbl[:, dr + ds:dr + 2 * ds]
    delta = _softplus(jnp.dot(dt_raw, wdt_r[...], preferred_element_type=f32)
                      + bdt_r[...])                                # (L, di)
    A_t = -jnp.exp(alog_r[...].astype(f32))                        # (ds, di)
    dA = jnp.exp(delta[:, None, :] * A_t[None, :, :])              # (L, ds, di)
    dBu = Bm[:, :, None] * (delta * xc)[:, None, :]                # (L, ds, di)

    st = jnp.zeros((ds, di), f32)                                  # state in vregs
    yrows = []
    for l in range(L):                                             # static unroll (L small)
        st = dA[l] * st + dBu[l]
        yrows.append(jnp.dot(Cm[l:l + 1, :], st, preferred_element_type=f32))
    y_ssm = jnp.concatenate(yrows, axis=0)                         # (L, di)
    y = (y_ssm + xc * dD_r[...]) * _silu(z)
    return jnp.dot(y, wout_r[...], preferred_element_type=f32)     # (L, dm)


# ------------------ stage A: LayerNorm + model1 + model2 (fused) -------------
_MKEYS = ("win", "wconv", "bconv", "wx", "wdt", "bdt", "alog", "dD", "wout")


def _weights_list(p, flat_alog):
    out = []
    for k in _MKEYS:
        v = p[k]
        if k == "alog" and flat_alog:
            # (d_state, d_inner) -> lane-dense (1, d_inner*d_state), k = i*ds + s
            v = jnp.transpose(v).reshape(1, v.shape[0] * v.shape[1])
        out.append(v)
    return out


def _make_stage_a_kernel(dims1):
    def kernel(*refs):
        x_ref, g_ref, b_ref = refs[0], refs[1], refs[2]
        w1 = refs[3:12]
        w2 = refs[12:21]
        m1o_ref, att_ref = refs[21], refs[22]
        dA_scr, dBu_scr, st_scr = refs[23], refs[24], refs[25]
        f32 = jnp.float32

        h = x_ref[0].astype(f32)                                   # (L, d_model)
        mu = jnp.mean(h, axis=-1, keepdims=True)
        var = jnp.mean((h - mu) ** 2, axis=-1, keepdims=True)
        xln = (h - mu) * lax.rsqrt(var + 1e-5) * g_ref[...] + b_ref[...]

        m1 = _mamba_flat(xln, w1, dims1, dA_scr, dBu_scr, st_scr)
        m1o_ref[0] = m1.astype(m1o_ref.dtype)
        att = _mamba_flat(xln, w2, dims1, dA_scr, dBu_scr, st_scr)
        att_ref[0] = att.astype(att_ref.dtype)
    return kernel


def stage_a(xseq, ln_g, ln_b, p1, p2, dims1):
    B, L, dm = xseq.shape
    assert L % 8 == 0
    K = dims1["d_inner"] * dims1["d_state"]
    weights = _weights_list(p1, True) + _weights_list(p2, True)
    in_specs = [pl.BlockSpec((1, L, dm), lambda i: (i, 0, 0)),
                pl.BlockSpec((1, dm), lambda i: (0, 0)),
                pl.BlockSpec((1, dm), lambda i: (0, 0))]
    for wv in weights:
        in_specs.append(pl.BlockSpec(wv.shape, lambda i, nd=wv.ndim: (0,) * nd))
    m1o, att = pl.pallas_call(
        _make_stage_a_kernel(dims1),
        out_shape=(jax.ShapeDtypeStruct((B, L, dm), xseq.dtype),
                   jax.ShapeDtypeStruct((B, L, dm), xseq.dtype)),
        grid=(B,),
        in_specs=in_specs,
        out_specs=(pl.BlockSpec((1, L, dm), lambda i: (i, 0, 0)),
                   pl.BlockSpec((1, L, dm), lambda i: (i, 0, 0))),
        scratch_shapes=[pltpu.VMEM((L, K), jnp.float32),
                        pltpu.VMEM((L, K), jnp.float32),
                        pltpu.VMEM((L, K), jnp.float32)],
        compiler_params=pltpu.CompilerParams(dimension_semantics=("parallel",)),
    )(xseq, ln_g.reshape(1, dm), ln_b.reshape(1, dm), *weights)
    return m1o, att


# ----------------------------- stage B: model3 -------------------------------
def _make_stage_b_kernel(dims3):
    def kernel(*refs):
        y_ref = refs[0]
        w3 = refs[1:10]
        o_ref = refs[10]
        out = _mamba_wide(y_ref[0].astype(jnp.float32), w3, dims3)
        o_ref[0] = out.astype(o_ref.dtype)
    return kernel


def stage_b(y, p3, dims3):
    B, L3, dm3 = y.shape
    w3 = _weights_list(p3, False)
    in_specs = [pl.BlockSpec((1, L3, dm3), lambda i: (i, 0, 0))]
    for wv in w3:
        in_specs.append(pl.BlockSpec(wv.shape, lambda i, nd=wv.ndim: (0,) * nd))
    return pl.pallas_call(
        _make_stage_b_kernel(dims3),
        out_shape=jax.ShapeDtypeStruct((B, L3, dm3), y.dtype),
        grid=(B,),
        in_specs=in_specs,
        out_specs=pl.BlockSpec((1, L3, dm3), lambda i: (i, 0, 0)),
        compiler_params=pltpu.CompilerParams(dimension_semantics=("parallel",)),
    )(y, *w3)


# ---------------------- softmax(dim=0) * z  (legacy nn.Softmax) --------------
def _softmul_kernel(a_ref, z_ref, o_ref):
    a = a_ref[...].astype(jnp.float32)
    z = z_ref[...].astype(jnp.float32)
    m = jnp.max(a, axis=0, keepdims=True)
    e = jnp.exp(a - m)
    s = jnp.sum(e, axis=0, keepdims=True)
    o_ref[...] = (e / s * z).astype(o_ref.dtype)


def softmax0_mul(att_logits, z):
    return pl.pallas_call(
        _softmul_kernel,
        out_shape=jax.ShapeDtypeStruct(att_logits.shape, att_logits.dtype),
    )(att_logits, z)


# ------------------------------- UVMB forward --------------------------------
def uvmb_forward(x_nchw, P):
    B, C, Wd, Hd = x_nchw.shape
    HW = Wd * Hd
    x_cf = jnp.transpose(x_nchw, (1, 0, 2, 3)).reshape(C, B * HW)

    # convb(x) + x   (two fused conv matmuls, batch folded into the lane dim)
    h1_cf = conv3x3_cf(x_nchw, P["convb1_w"], P["convb1_b"], relu=True)    # (16, B*HW)
    h1 = jnp.transpose(h1_cf.reshape(16, B, Wd, Hd), (1, 0, 2, 3))
    x2_cf = conv3x3_cf(h1, P["convb2_w"], P["convb2_b"], residual_cf=x_cf)  # (C, B*HW)

    # PyTorch raw reshape (b, c, w, h) -> (b, w*h, c)
    x2 = jnp.transpose(x2_cf.reshape(C, B, HW), (1, 0, 2))                 # (B, C, HW)
    xseq = x2.reshape(B, HW, C)

    # LayerNorm + model1 + model2 fused; then model3; then softmax(dim=0)*z.
    m1o, att = stage_a(xseq, P["ln_g"], P["ln_b"], P["m1"], P["m2"], P["m1_dims"])
    y = jnp.transpose(m1o, (0, 2, 1))                                      # (B, C, HW)
    m3o = stage_b(y, P["m3"], P["m3_dims"])                                # (B, C, HW)
    z = jnp.transpose(m3o, (0, 2, 1))                                      # (B, HW, C)
    result = softmax0_mul(att, z)                                          # (B, HW, C)

    out_nchw = result.reshape(B, C, Wd, Hd)                                # raw reshape
    sm_cf = conv3x3_cf(out_nchw, P["smooth_w"], P["smooth_b"])             # (C, B*HW)
    return jnp.transpose(sm_cf.reshape(C, B, Wd, Hd), (1, 0, 2, 3))


# ------------------------------ parameter init --------------------------------
def _nrm(key, shape, scale=0.1):
    return scale * jax.random.normal(key, shape, jnp.float32)


def init_mamba(key, d_model, d_state, d_conv, expand):
    d_inner = expand * d_model
    dt_rank = math.ceil(d_model / 16)
    ks = jax.random.split(key, 7)
    params = dict(
        win=_nrm(ks[0], (d_model, 2 * d_inner)),             # in_proj.weight.T
        wconv=_nrm(ks[1], (d_conv, d_inner)),                # conv1d.weight[:,0,:].T
        bconv=_nrm(ks[2], (1, d_inner)),                     # conv1d.bias
        wx=_nrm(ks[3], (d_inner, dt_rank + 2 * d_state)),    # x_proj.weight.T
        wdt=_nrm(ks[4], (dt_rank, d_inner)),                 # dt_proj.weight.T
        bdt=_nrm(ks[5], (1, d_inner)) + 0.5,                 # dt_proj.bias
        alog=jnp.tile(jnp.log(jnp.arange(1, d_state + 1, dtype=jnp.float32))[:, None],
                      (1, d_inner)),                         # A_log.T (S4D-real init)
        dD=jnp.ones((1, d_inner), jnp.float32),              # D
        wout=_nrm(ks[6], (d_inner, d_model)),                # out_proj.weight.T
    )
    dims = dict(d_model=d_model, d_inner=d_inner, d_state=d_state,
                dt_rank=dt_rank, d_conv=d_conv)
    return params, dims


def init_params(key, c, w, h):
    ks = jax.random.split(key, 9)
    m1, d1 = init_mamba(ks[4], d_model=c, d_state=16, d_conv=4, expand=2)
    m2, d2 = init_mamba(ks[5], d_model=c, d_state=16, d_conv=4, expand=2)
    m3, d3 = init_mamba(ks[6], d_model=w * h, d_state=8, d_conv=4, expand=2)
    return dict(
        convb1_w=_nrm(ks[0], (16, c, 3, 3)), convb1_b=_nrm(ks[1], (16,)),
        convb2_w=_nrm(ks[2], (c, 16, 3, 3)), convb2_b=_nrm(ks[3], (c,)),
        ln_g=jnp.ones((c,), jnp.float32), ln_b=jnp.zeros((c,), jnp.float32),
        m1=m1, m1_dims=d1, m2=m2, m2_dims=d2, m3=m3, m3_dims=d3,
        smooth_w=_nrm(ks[7], (c, c, 3, 3)), smooth_b=_nrm(ks[8], (c,)),
    )


# ------------------------- pure-JAX reference (checking) ----------------------
_HP = jax.lax.Precision.HIGHEST


def _ref_conv(x_nchw, w, b):
    y = jax.lax.conv_general_dilated(
        x_nchw, w, window_strides=(1, 1), padding=((1, 1), (1, 1)),
        dimension_numbers=("NCHW", "OIHW", "NCHW"), precision=_HP)
    return y + b[None, :, None, None]


def _ref_ln(x, g, b):
    mu = jnp.mean(x, -1, keepdims=True)
    var = jnp.mean((x - mu) ** 2, -1, keepdims=True)
    return (x - mu) / jnp.sqrt(var + 1e-5) * g + b


def _ref_mamba(hidden, p, dims):
    di, ds = dims["d_inner"], dims["d_state"]
    dr, dc = dims["dt_rank"], dims["d_conv"]
    L = hidden.shape[1]

    def one(h):
        xz = jnp.dot(h, p["win"], precision=_HP)
        x, z = xz[:, :di], xz[:, di:]
        xpad = jnp.concatenate([jnp.zeros((dc - 1, di), jnp.float32), x], axis=0)
        xc = sum(xpad[k:k + L] * p["wconv"][k:k + 1] for k in range(dc)) + p["bconv"]
        xc = _silu(xc)
        xdbl = jnp.dot(xc, p["wx"], precision=_HP)
        dt_raw, Bm, Cm = xdbl[:, :dr], xdbl[:, dr:dr + ds], xdbl[:, dr + ds:]
        delta = _softplus(jnp.dot(dt_raw, p["wdt"], precision=_HP) + p["bdt"])
        A_t = -jnp.exp(p["alog"])
        dA = jnp.exp(delta[:, None, :] * A_t[None, :, :])
        dBu = Bm[:, :, None] * (delta * xc)[:, None, :]

        def step(st, inp):
            dA_l, dBu_l, c_l = inp
            st = dA_l * st + dBu_l
            return st, jnp.dot(c_l, st, precision=_HP)

        _, ys = jax.lax.scan(step, jnp.zeros((ds, di), jnp.float32), (dA, dBu, Cm))
        y = (ys + xc * p["dD"]) * _silu(z)
        return jnp.dot(y, p["wout"], precision=_HP)

    return jax.vmap(one)(hidden)


def ref_forward(x, P):
    b, c, w, h = x.shape
    h1 = jnp.maximum(_ref_conv(x, P["convb1_w"], P["convb1_b"]), 0.0)
    x2 = _ref_conv(h1, P["convb2_w"], P["convb2_b"]) + x
    xseq = jnp.reshape(x2, (b, w * h, c))
    xln = _ref_ln(xseq, P["ln_g"], P["ln_b"])
    m1 = _ref_mamba(xln, P["m1"], P["m1_dims"])
    y = jnp.transpose(m1, (0, 2, 1))
    z = jnp.transpose(_ref_mamba(y, P["m3"], P["m3_dims"]), (0, 2, 1))
    att = jax.nn.softmax(_ref_mamba(xln, P["m2"], P["m2_dims"]), axis=0)
    out = jnp.reshape(att * z, (b, c, w, h))
    return _ref_conv(out, P["smooth_w"], P["smooth_b"])


# ------------------------------------ main ------------------------------------
if __name__ == "__main__":
    B, C, W, H = 2, 4, 16, 16
    key = jax.random.PRNGKey(0)
    kx, kp = jax.random.split(key)
    x = jax.random.normal(kx, (B, C, W, H), jnp.float32)
    P = init_params(kp, C, W, H)

    out = jax.block_until_ready(uvmb_forward(x, P))
    ref = jax.block_until_ready(ref_forward(x, P))

    assert out.shape == (B, C, W, H)
    assert bool(jnp.isfinite(out).all())
    assert bool(jnp.allclose(out, ref, rtol=2e-2, atol=2e-2)), \
        f"max abs diff = {float(jnp.max(jnp.abs(out - ref)))}"
    print("KERNEL_OK")
</pallas_src>

<mosaic_0001>
module attributes {stable_mosaic.version = 11 : i64} {
  func.func @kernel(%arg0: memref<16x36xf32, #tpu.memory_space<vmem>>, %arg1: memref<36x512xf32, #tpu.memory_space<vmem>>, %arg2: memref<16x1xf32, #tpu.memory_space<vmem>>, %arg3: memref<16x512xf32, #tpu.memory_space<vmem>>) attributes {dimension_semantics = [], scalar_prefetch = 0 : i64, scratch_operands = 0 : i64, tpu.core_type = #tpu.core_type<tc>} {
    %c0 = arith.constant 0 : index
    %c0_0 = arith.constant 0 : index
    %0 = vector.load %arg0[%c0, %c0_0] : memref<16x36xf32, #tpu.memory_space<vmem>>, vector<16x36xf32>
    %c0_1 = arith.constant 0 : index
    %c0_2 = arith.constant 0 : index
    %1 = vector.load %arg1[%c0_1, %c0_2] : memref<36x512xf32, #tpu.memory_space<vmem>>, vector<36x512xf32>
    %cst = arith.constant dense<0.000000e+00> : vector<16x512xf32>
    %2 = tpu.matmul %0, %1, %cst {dimension_numbers = #tpu.dot_dimension_numbers<[1], [0], [0], [1], [0, 0, 1, 1], [], []>} : vector<16x36xf32>, vector<36x512xf32>, vector<16x512xf32> -> vector<16x512xf32>
    %c0_3 = arith.constant 0 : index
    %c0_4 = arith.constant 0 : index
    %3 = vector.load %arg2[%c0_3, %c0_4] : memref<16x1xf32, #tpu.memory_space<vmem>>, vector<16x1xf32>
    %4 = vector.broadcast %3 : vector<16x1xf32> to vector<16x512xf32>
    %5 = arith.addf %2, %4 : vector<16x512xf32>
    %cst_5 = arith.constant 0.000000e+00 : f32
    %6 = vector.broadcast %cst_5 : f32 to vector<16x512xf32>
    %7 = arith.maximumf %5, %6 : vector<16x512xf32>
    %c0_6 = arith.constant 0 : index
    %c0_7 = arith.constant 0 : index
    %8 = vector.load %arg3[%c0_6, %c0_7] : memref<16x512xf32, #tpu.memory_space<vmem>>, vector<16x512xf32>
    tpu.vector_store %arg3[%c0_6, %c0_7], %7 {strides = array<i32>} : memref<16x512xf32, #tpu.memory_space<vmem>>, vector<16x512xf32>,
    return
  }
}

</mosaic_0001>

<bundles_post_ra>
// kernel: tpu_custom_call.1
= control target key start
LH: loop header
LB: loop body
LE: loop exit
PB: predicated region body
PF: predicated region fallthrough
CT: control target
= control target key end

     0   :  { %8 = vsyncpa [#allocation3], 0  ;;  %s379_s0 = inlined_call_operand.vmem [shape: f32[16,36], index: 0, kind: input, shape index: {}]   ;;  %s380_s1 = inlined_call_operand.hbm [shape: f32[36,512], index: 1, kind: input, shape index: {}]   ;;  %s381_s2 = inlined_call_operand.vmem [shape: f32[16,1], index: 2, kind: input, shape index: {}]   ;;  %s382_s3 = inlined_call_operand.hbm [shape: f32[16,512], index: 3, kind: output, shape index: {}]  }
   0x1   :  { %9 = vsyncpa [#allocation4], 0  ;;  %s329_s12 = smov [#allocation2]  }
   0x2   :  { %s17_s13 = sshll.u32 %s329_s12, 4  ;;  %s18_s13 = int_to_ptr.vmem [resolvable:$true] %s17_s13 }
   0x3   :  { %s293_s14 = scalar_lea.vmem %s18_s13, 2560  ;;  %p298_p1 = scmp.lt.s32.totalorder %s18_s13, %s18_s13 }
   0x4   :  { %p294_p0 = scmp.ne.s32.totalorder %s18_s13, %s293_s14  ;;  %p299_p2 = scmp.lt.s32.totalorder %s293_s14, %s293_s14 }
   0x6   :  { %p300_p3 = por %p299_p2, %p298_p1 }
   0x8   :  { %p301_p4 = pnand %p300_p3, %p294_p0 }
   0xa   :  { %304 = shalt.err (!%p301_p4)
}
   0xb   :  { %s330_s15 = smov 512   ;;  %s331_s16 = smov 32  }
   0xc   :  { %23 = dma.hbm_to_vmem [thread:$0]  %s380_s1, 2560, %s18_s13, [#allocation3], %s330_s15, %s330_s15, %s331_s16  }
   0xd   :  { %325 = dma.done.wait [#allocation3], 2560  }
   0xe   :  { %326 = vsyncadd [#allocation3], 4294964736  ;;  %v332_v0 = vmov 0.0   ;;  %v333_v1 = vmov 0   ;;  %vm70_vm0 = vcmask 1043456   ;;  %v44_v6 = vld [vmem:[#allocation2 + $0x68] sm:$0xff] }
   0xf   :  { %147 = vmatprep.mubr.f32.mxu0 %v332_v0  ;;  %224 = vmatprep.mubr.f32.mxu1 %v332_v0  ;;  %v48_v2 = vld [vmem:[#allocation2 + $0x88] sm:$0xf]  ;;  %v50_v3 = vld [vmem:[#allocation2 + $0x98] sm:$0xf]  ;;  %v47_v4 = vld [vmem:[#allocation2 + $0x80] sm:$0xf] }
  0x10   :  { %284 = vset.pattern.permute.xlu0 %v333_v1  ;;  %270 = vmatprep.subr.msk.mxu0 %vm70_vm0, %v48_v2  ;;  %v49_v5 = vld [vmem:[#allocation2 + $0x90] sm:$0xf]  ;;  %v46_v7 = vld [vmem:[#allocation2 + $0x78] sm:$0xff]  ;;  %v43_v8 = vld [vmem:[#allocation2 + $0x60] sm:$0xff]  ;;  %vm63_vm1 = vcmask 293888  }
  0x11   :  { %274 = vmatprep.subr.msk.mxu1 %vm70_vm0, %v50_v3  ;;  %271 = vmatpush1.msk.msra.mxu0 %vm70_vm0, %v47_v4  ;;  %v45_v9 = vld [vmem:[#allocation2 + $0x70] sm:$0xff]  ;;  %v40_v10 = vld [vmem:[#allocation2 + $0x48] sm:$0xff]  ;;  %v42_v11 = vld [vmem:[#allocation2 + $0x58] sm:$0xff] }
  0x12   :  { %275 = vmatpush1.msk.msra.mxu1 %vm70_vm0, %v49_v5  ;;  %107 = vmatprep.subr.mxu0 %v44_v6  ;;  %v39_v12 = vld [vmem:[#allocation2 + $0x40] sm:$0xff]  ;;  %v41_v13 = vld [vmem:[#allocation2 + $0x50] sm:$0xff]  ;;  %v36_v14 = vld [vmem:[#allocation2 + $0x28] sm:$0xff] }
  0x13   :  { %184 = vmatprep.subr.mxu1 %v46_v7  ;;  %108 = vmatpush1.msra.mxu0 %v43_v8  ;;  %v38_v15 = vld [vmem:[#allocation2 + $0x38] sm:$0xff]  ;;  %v35_v16 = vld [vmem:[#allocation2 + $0x20] sm:$0xff]  ;;  %v37_v17 = vld [vmem:[#allocation2 + $0x30] sm:$0xff] }
  0x14   :  { %185 = vmatpush1.msra.mxu1 %v45_v9  ;;  %109 = vmatprep.subr.mxu0 %v40_v10  ;;  %v32_v18 = vld [vmem:[#allocation2 + $0x8] sm:$0xff]  ;;  %v34_v19 = vld [vmem:[#allocation2 + $0x18] sm:$0xff]  ;;  %v31_v20 = vld [vmem:[#allocation2] sm:$0xff] }
  0x15   :  { %186 = vmatprep.subr.mxu1 %v42_v11  ;;  %110 = vmatpush1.msra.mxu0 %v39_v12  ;;  %v33_v21 = vld [vmem:[#allocation2 + $0x10] sm:$0xff]  ;;  %v29_v22 = vld [vmem:[%s379_s0] sm:$0xff]  ;;  %v30_v24 = vld [vmem:[%s379_s0 + $0x8] sm:$0xff]  ;;  %s334_s0 = smov [#allocation5]  }
  0x16   :  { %187 = vmatpush1.msra.mxu1 %v41_v13  ;;  %111 = vmatprep.subr.mxu0 %v36_v14  ;;  %v51_v23 = vld [vmem:[%s381_s2] sm:$0xff]  ;;  %v52_v25 = vld [vmem:[%s381_s2 + $0x8] sm:$0xff]  ;;  %s258_s2 = sshll.u32 %s334_s0, 4  ;;  %s259_s2 = int_to_ptr.vmem [resolvable:$true] %s258_s2 }
  0x17   :  { %188 = vmatprep.subr.mxu1 %v38_v15  ;;  %112 = vmatpush1.msra.mxu0 %v35_v16  ;;  %s305_s26 = scalar_lea.vmem %s259_s2, 1024  ;;  %p310_p6 = scmp.lt.s32.totalorder %s259_s2, %s259_s2 }
  0x18   :  { %189 = vmatpush1.msra.mxu1 %v37_v17  ;;  %113 = vmatprep.subr.mxu0 %v32_v18  ;;  %p306_p5 = scmp.ne.s32.totalorder %s259_s2, %s305_s26  ;;  %p311_p7 = scmp.lt.s32.totalorder %s305_s26, %s305_s26 }
  0x19   :  { %190 = vmatprep.subr.mxu1 %v34_v19  ;;  %114 = vmatpush1.msra.mxu0 %v31_v20 }
  0x1a   :  { %191 = vmatpush1.msra.mxu1 %v33_v21  ;;  %272 = vmatmul.mubr.msk.f32.vlgmr.msra.gmra.mxu0 %vm63_vm1, %v29_v22  ;;  %p312_p8 = por %p311_p7, %p310_p6 }
  0x1b   :  { %276 = vmatmul.mubr.msk.f32.vlgmr.msra.gmra.mxu1 %vm63_vm1, %v29_v22  ;;  %153 = vmatprep.mubr.f32.mxu0 %v332_v0 }
  0x1c   :  { %230 = vmatprep.mubr.f32.mxu1 %v332_v0  ;;  %55 = vperm.xlu0 %284, %v51_v23   ;;  %p313_p9 = pnand %p312_p8, %p306_p5 }
  0x1e   :  { %273 = vmatmul.mubr.msk.f32.gmra.mxu0 %vm63_vm1, %v30_v24 }
  0x1f   :  { %277 = vmatmul.mubr.msk.f32.gmra.mxu1 %vm63_vm1, %v30_v24 }
  0x20   :  { %60 = vperm.xlu0 %284, %v52_v25  }
  0x97   :  { %v56_v26 = vpop.permute.xlu0 %55 }
  0x9b   :  { %v61_v35 = vpop.permute.xlu0 %60 }
  0xda   :  { %v149_v27 = vpop.f32.mrf.mxu0 }
  0xdb   :  { %v226_v28 = vpop.f32.mrf.mxu1  ;;  %v150_v29 = vadd.f32 %v149_v27, %v56_v26 }
  0xdc   :  { %v227_v30 = vadd.f32 %v226_v28, %v56_v26  ;;  %v151_v31 = vpop.f32.mrf.mxu0 }
  0xdd   :  { %v228_v32 = vpop.f32.mrf.mxu1  ;;  %v237_v33 = vmax.f32 %v150_v29, 0.0  ;;  %v152_v36 = vadd.f32 %v151_v31, %v56_v26 }
  0xde   :  { %v239_v34 = vmax.f32 %v227_v30, 0.0  ;;  %v229_v37 = vadd.f32 %v228_v32, %v56_v26  ;;  %v155_v38 = vpop.f32.mrf.mxu0 }
  0xdf   :  { %v232_v39 = vpop.f32.mrf.mxu1  ;;  %245 = vst [vmem:[#allocation5] sm:$0xff] %v237_v33  ;;  %v238_v40 = vmax.f32 %v152_v36, 0.0  ;;  %v156_v42 = vadd.f32 %v155_v38, %v61_v35 }
  0xe0   :  { %247 = vst [vmem:[#allocation5 + $0x10] sm:$0xff] %v239_v34  ;;  %v240_v41 = vmax.f32 %v229_v37, 0.0  ;;  %v233_v43 = vadd.f32 %v232_v39, %v61_v35  ;;  %v157_v44 = vpop.f32.mrf.mxu0 }
  0xe1   :  { %v234_v45 = vpop.f32.mrf.mxu1  ;;  %246 = vst [vmem:[#allocation5 + $0x8] sm:$0xff] %v238_v40  ;;  %v241_v46 = vmax.f32 %v156_v42, 0.0  ;;  %v158_v48 = vadd.f32 %v157_v44, %v61_v35 }
  0xe2   :  { %248 = vst [vmem:[#allocation5 + $0x18] sm:$0xff] %v240_v41  ;;  %v243_v47 = vmax.f32 %v233_v43, 0.0  ;;  %v235_v49 = vadd.f32 %v234_v45, %v61_v35 }
  0xe3   :  { %249 = vst [vmem:[#allocation5 + $0x20] sm:$0xff] %v241_v46  ;;  %v242_v50 = vmax.f32 %v158_v48, 0.0 }
  0xe4   :  { %251 = vst [vmem:[#allocation5 + $0x30] sm:$0xff] %v243_v47  ;;  %v244_v51 = vmax.f32 %v235_v49, 0.0 }
  0xe5   :  { %250 = vst [vmem:[#allocation5 + $0x28] sm:$0xff] %v242_v50 }
  0xe6   :  { %252 = vst [vmem:[#allocation5 + $0x38] sm:$0xff] %v244_v51 }
  0xe7   :  { %316 = shalt.err (!%p313_p9)
}
  0xe8   :  { %264 = dma.vmem_to_hbm [thread:$0]  %s259_s2, 1024, %s382_s3, [#allocation4], %s330_s15, %s330_s15, %s331_s16  }
  0xe9   :  { %327 = dma.done.wait [#allocation4], 1024  }
  0xea   :  { %328 = vsyncadd [#allocation4], 4294966272 }
  0xeb   :  { %268 = vsyncpa [#allocation3], 1 }
  0xec   :  { %269 = vsyncpa [#allocation4], 1 }

</bundles_post_ra>
